<compile_context>
chip_gen: v6e
topology: v6e:2x2x1
jax: 0.10.0
libtpu: 0.0.40
codegen_flags: <defaults>
</compile_context>

<pallas_src>
import functools

import jax
import jax.numpy as jnp
from jax.experimental import pallas as pl
from jax.experimental.pallas import tpu as pltpu

_LANE = 128      # all feature dims zero-padded to this many lanes
_SUBLANE = 8     # graph/batch axis of the pooled output padded to this


def _round_up(v, m):
    return ((v + m - 1) // m) * m


# ---------------------------------------------------------------------------
# Fused Pallas kernel: conv1+bn1+relu -> conv2+bn2+relu -> mean-pool -> MLP
# One grid step = one molecule batch; weights are resident (index_map -> (0,0)).
# ---------------------------------------------------------------------------

def _fused_gcn_kernel(a_ref, x_ref, p_ref, w_ref, b_ref, o_ref, *, fin):
    """a_ref [1,N,N] bf16; x_ref [1,N,Fin] bf16; p_ref [1,Bp,N] bf16;
    w_ref [Fin+3*128,128] bf16 (w1 | w2 | wf1 | wf2 stacked, zero-padded);
    b_ref [8,128] f32 (rows: t1, t2, bf1, bf2); o_ref [1,Bp,128] f32."""
    a = a_ref[0]                                   # [N, N]
    x = x_ref[0]                                   # [N, Fin]
    p = p_ref[0]                                   # [Bp, N]

    w1 = w_ref[0:fin, :]                           # [Fin, 128]
    w2 = w_ref[fin:fin + _LANE, :]                 # [128, 128]
    wf1 = w_ref[fin + _LANE:fin + 2 * _LANE, :]    # [128, 128]
    wf2 = w_ref[fin + 2 * _LANE:fin + 3 * _LANE, :]
    t1 = b_ref[0:1, :]
    t2 = b_ref[1:2, :]
    bf1 = b_ref[2:3, :]
    bf2 = b_ref[3:4, :]

    # --- GCN layer 1 + folded BN1 + ReLU (Fin << padded Fout -> (A@X)@W1) ----
    ax = jnp.dot(a, x, preferred_element_type=jnp.float32)
    h1 = jnp.dot(ax.astype(jnp.bfloat16), w1,
                 preferred_element_type=jnp.float32) + t1
    h1 = jnp.maximum(h1, 0.0).astype(jnp.bfloat16)
    # TODO(synk): dropout is identity in eval mode; training-mode dropout not emitted.

    # --- GCN layer 2 + folded BN2 + ReLU ------------------------------------
    ah1 = jnp.dot(a, h1, preferred_element_type=jnp.float32).astype(jnp.bfloat16)
    h2 = jnp.dot(ah1, w2, preferred_element_type=jnp.float32) + t2
    h2 = jnp.maximum(h2, 0.0).astype(jnp.bfloat16)

    # --- global_mean_pool (P @ H2) + 2-layer MLP classifier ------------------
    pooled = jnp.dot(p, h2, preferred_element_type=jnp.float32).astype(jnp.bfloat16)
    z = jnp.dot(pooled, wf1, preferred_element_type=jnp.float32) + bf1
    z = jnp.maximum(z, 0.0).astype(jnp.bfloat16)   # post-ReLU dropout = identity (eval)
    o_ref[0] = jnp.dot(z, wf2, preferred_element_type=jnp.float32) + bf2


# ---------------------------------------------------------------------------
# Host-side preprocessing (hoisted out of the forward path; done once)
# ---------------------------------------------------------------------------

def build_normalized_adjacency(edge_index, num_nodes):
    """A_hat = D^-1/2 (A + missing self-loops) D^-1/2 (PyG gcn_norm semantics:
    existing self-edges keep their weight, self-loops are only added where absent)."""
    src, dst = edge_index[0], edge_index[1]
    adj = jnp.zeros((num_nodes, num_nodes), jnp.float32).at[dst, src].add(1.0)
    diag = jnp.diagonal(adj)
    adj = adj + jnp.diag(jnp.where(diag == 0.0, 1.0, 0.0))
    deg = jnp.sum(adj, axis=1)
    d_inv_sqrt = jnp.where(deg > 0, jax.lax.rsqrt(deg), 0.0)
    return adj * d_inv_sqrt[:, None] * d_inv_sqrt[None, :]


def build_mean_pool_matrix(batch, num_graphs, num_nodes):
    """[B_pad, N] mean-pool matrix; rows beyond num_graphs are zero."""
    b_pad = _round_up(max(num_graphs, _SUBLANE), _SUBLANE)
    onehot = (batch[None, :] == jnp.arange(num_graphs)[:, None]).astype(jnp.float32)
    counts = jnp.maximum(jnp.sum(onehot, axis=1, keepdims=True), 1.0)
    p = onehot / counts
    return jnp.pad(p, ((0, b_pad - num_graphs), (0, 0)))


def fold_gcn_bn(w, b, gamma, beta, mean, var, eps=1e-5):
    """Fold eval-mode BatchNorm into the conv weight/bias (identical numerics)."""
    scale = gamma / jnp.sqrt(var + eps)
    shift = beta - mean * scale
    return w * scale[None, :], b * scale + shift


def _pad2(a, rows, cols):
    return jnp.pad(a, ((0, rows - a.shape[0]), (0, cols - a.shape[1])))


def prepare_inference_params(params):
    """Fold BN, zero-pad every feature dim to 128 lanes, and pack into 2 slabs."""
    in_dim, _ = params["w_conv1"].shape

    w1, t1 = fold_gcn_bn(params["w_conv1"], params["b_conv1"],
                         params["bn1_gamma"], params["bn1_beta"],
                         params["bn1_mean"], params["bn1_var"])
    w2, t2 = fold_gcn_bn(params["w_conv2"], params["b_conv2"],
                         params["bn2_gamma"], params["bn2_beta"],
                         params["bn2_mean"], params["bn2_var"])

    # Zero rows/cols keep the math exact while making every MXU push lane-dense.
    w_slab = jnp.concatenate([
        _pad2(w1, in_dim, _LANE),                 # [Fin, 128]
        _pad2(w2, _LANE, _LANE),                  # [128, 128]
        _pad2(params["w_fc1"], _LANE, _LANE),     # [128, 128]
        _pad2(params["w_fc2"], _LANE, _LANE),     # [128, 128]
    ], axis=0).astype(jnp.bfloat16)               # [Fin + 384, 128]

    def padrow(v):
        return jnp.pad(v, ((0, _LANE - v.shape[0]),))

    b_slab = jnp.zeros((_SUBLANE, _LANE), jnp.float32)
    b_slab = b_slab.at[0].set(padrow(t1))
    b_slab = b_slab.at[1].set(padrow(t2))
    b_slab = b_slab.at[2].set(padrow(params["b_fc1"]))
    b_slab = b_slab.at[3].set(padrow(params["b_fc2"]))
    return w_slab, b_slab


def init_params(key, in_dim, hidden_dim, out_dim, num_classes):
    ks = jax.random.split(key, 8)
    return {
        "w_conv1": jax.random.normal(ks[0], (in_dim, out_dim), jnp.float32) * 0.1,
        "b_conv1": jnp.zeros((out_dim,), jnp.float32),
        "w_conv2": jax.random.normal(ks[1], (out_dim, out_dim), jnp.float32) * 0.1,
        "b_conv2": jnp.zeros((out_dim,), jnp.float32),
        # BatchNorm1d (eval-mode running stats)
        "bn1_gamma": 1.0 + 0.05 * jax.random.normal(ks[2], (out_dim,), jnp.float32),
        "bn1_beta": 0.05 * jax.random.normal(ks[3], (out_dim,), jnp.float32),
        "bn1_mean": jnp.zeros((out_dim,), jnp.float32),
        "bn1_var": jnp.ones((out_dim,), jnp.float32),
        "bn2_gamma": 1.0 + 0.05 * jax.random.normal(ks[4], (out_dim,), jnp.float32),
        "bn2_beta": 0.05 * jax.random.normal(ks[5], (out_dim,), jnp.float32),
        "bn2_mean": jnp.zeros((out_dim,), jnp.float32),
        "bn2_var": jnp.ones((out_dim,), jnp.float32),
        # classifier
        "w_fc1": jax.random.normal(ks[6], (out_dim, hidden_dim), jnp.float32) * 0.1,
        "b_fc1": jnp.zeros((hidden_dim,), jnp.float32),
        "w_fc2": jax.random.normal(ks[7], (hidden_dim, num_classes), jnp.float32) * 0.1,
        "b_fc2": jnp.zeros((num_classes,), jnp.float32),
    }


# ---------------------------------------------------------------------------
# Forward: one gridded pallas_call over all stacked molecule batches
# ---------------------------------------------------------------------------

@functools.partial(jax.jit, static_argnames=("num_graphs", "num_classes"))
def molecule_gcn_forward(x_b, a_hat_b, p_pool_b, w_slab, b_slab,
                         num_graphs, num_classes):
    nb, n, fin = x_b.shape
    bp = p_pool_b.shape[1]
    w_rows = w_slab.shape[0]

    flops = 2 * nb * (n * n * fin + n * fin * _LANE + n * n * _LANE
                      + n * _LANE * _LANE + bp * n * _LANE
                      + 2 * bp * _LANE * _LANE)
    bytes_accessed = ((a_hat_b.size + x_b.size + p_pool_b.size + w_slab.size) * 2
                      + b_slab.size * 4 + nb * bp * _LANE * 4)

    kernel = functools.partial(_fused_gcn_kernel, fin=fin)
    logits_padded = pl.pallas_call(
        kernel,
        out_shape=jax.ShapeDtypeStruct((nb, bp, _LANE), jnp.float32),
        grid=(nb,),
        in_specs=[
            pl.BlockSpec((1, n, n), lambda b: (b, 0, 0)),          # A_hat per batch
            pl.BlockSpec((1, n, fin), lambda b: (b, 0, 0)),        # X per batch
            pl.BlockSpec((1, bp, n), lambda b: (b, 0, 0)),         # P per batch
            pl.BlockSpec((w_rows, _LANE), lambda b: (0, 0)),       # shared weight slab
            pl.BlockSpec((_SUBLANE, _LANE), lambda b: (0, 0)),     # shared bias slab
        ],
        out_specs=pl.BlockSpec((1, bp, _LANE), lambda b: (b, 0, 0)),
        compiler_params=pltpu.CompilerParams(
            dimension_semantics=("parallel",),          # shards across v7x's 2 TCs
            vmem_limit_bytes=32 * 1024 * 1024),
        cost_estimate=pl.CostEstimate(flops=flops, transcendentals=0,
                                      bytes_accessed=bytes_accessed),
    )(a_hat_b, x_b, p_pool_b, w_slab, b_slab)
    return logits_padded[:, :num_graphs, :num_classes]


# ---------------------------------------------------------------------------
# Pure-JAX f32 reference (unfolded BN) for correctness checking
# ---------------------------------------------------------------------------

def reference_forward(x, a_hat, p_pool, params, num_graphs):
    def bn(h, g, b, m, v, eps=1e-5):
        return (h - m) * (g / jnp.sqrt(v + eps)) + b
    h = a_hat @ (x @ params["w_conv1"]) + params["b_conv1"]
    h = jnp.maximum(bn(h, params["bn1_gamma"], params["bn1_beta"],
                       params["bn1_mean"], params["bn1_var"]), 0.0)
    h = a_hat @ (h @ params["w_conv2"]) + params["b_conv2"]
    h = jnp.maximum(bn(h, params["bn2_gamma"], params["bn2_beta"],
                       params["bn2_mean"], params["bn2_var"]), 0.0)
    pooled = p_pool[:num_graphs] @ h
    z = jnp.maximum(pooled @ params["w_fc1"] + params["b_fc1"], 0.0)
    return z @ params["w_fc2"] + params["b_fc2"]


# ---------------------------------------------------------------------------
# Main
# ---------------------------------------------------------------------------

if __name__ == "__main__":
    NUM_BATCHES = 8            # stacked molecule batches -> leading grid axis
    GRAPHS_PER_BATCH = 8
    NODES_PER_GRAPH = 16
    N_NODES = GRAPHS_PER_BATCH * NODES_PER_GRAPH   # 128: MXU-friendly node axis
    N_EDGES = 256
    IN_DIM, HIDDEN_DIM, OUT_DIM, NUM_CLASSES = 16, 64, 32, 8

    key = jax.random.PRNGKey(0)
    key, k_params = jax.random.split(key)
    params = init_params(k_params, IN_DIM, HIDDEN_DIM, OUT_DIM, NUM_CLASSES)

    batch_vec = jnp.repeat(jnp.arange(GRAPHS_PER_BATCH), NODES_PER_GRAPH)

    xs, a_hats, p_pools = [], [], []
    for _ in range(NUM_BATCHES):
        key, kx, kg, ks, kd = jax.random.split(key, 5)
        x = jax.random.normal(kx, (N_NODES, IN_DIM), jnp.float32)
        g_of_e = jax.random.randint(kg, (N_EDGES,), 0, GRAPHS_PER_BATCH)
        src = g_of_e * NODES_PER_GRAPH + jax.random.randint(
            ks, (N_EDGES,), 0, NODES_PER_GRAPH)
        dst = g_of_e * NODES_PER_GRAPH + jax.random.randint(
            kd, (N_EDGES,), 0, NODES_PER_GRAPH)
        edge_index = jnp.stack([src, dst], axis=0)            # [2, E]
        xs.append(x)
        a_hats.append(build_normalized_adjacency(edge_index, N_NODES))
        p_pools.append(build_mean_pool_matrix(batch_vec, GRAPHS_PER_BATCH, N_NODES))

    x_f32 = jnp.stack(xs)                                      # [NB, N, Fin]
    a_hat_f32 = jnp.stack(a_hats)                              # [NB, N, N]
    p_pool_f32 = jnp.stack(p_pools)                            # [NB, Bp, N]

    # Hoisted preprocessing: done once per batch-stack / per checkpoint.
    w_slab, b_slab = prepare_inference_params(params)
    x_b = x_f32.astype(jnp.bfloat16)
    a_hat_b = a_hat_f32.astype(jnp.bfloat16)
    p_pool_b = p_pool_f32.astype(jnp.bfloat16)
    jax.block_until_ready((x_b, a_hat_b, p_pool_b, w_slab, b_slab))

    logits = molecule_gcn_forward(x_b, a_hat_b, p_pool_b, w_slab, b_slab,
                                  GRAPHS_PER_BATCH, NUM_CLASSES)
    logits = jax.block_until_ready(logits)
    assert logits.shape == (NUM_BATCHES, GRAPHS_PER_BATCH, NUM_CLASSES)

    # Sanity check against a pure-JAX f32 reference (bf16 operands -> loose tol).
    ref = jnp.stack([reference_forward(x_f32[i], a_hat_f32[i], p_pool_f32[i],
                                       params, GRAPHS_PER_BATCH)
                     for i in range(NUM_BATCHES)])
    max_err = float(jnp.max(jnp.abs(logits - ref)))
    assert max_err < 0.05, f"max abs error vs reference = {max_err}"

    print("KERNEL_OK")
</pallas_src>

<mosaic_0001>
module attributes {stable_mosaic.version = 11 : i64} {
  func.func @_fused_gcn_kernel(%arg0: i32, %arg1: memref<1x128x128xbf16, #tpu.memory_space<vmem>>, %arg2: memref<1x128x16xbf16, #tpu.memory_space<vmem>>, %arg3: memref<1x8x128xbf16, #tpu.memory_space<vmem>>, %arg4: memref<400x128xbf16, #tpu.memory_space<vmem>>, %arg5: memref<8x128xf32, #tpu.memory_space<vmem>>, %arg6: memref<1x8x128xf32, #tpu.memory_space<vmem>>) attributes {dimension_semantics = [#tpu.dimension_semantics<parallel>], iteration_bounds = array<i64: 8>, scalar_prefetch = 0 : i64, scratch_operands = 0 : i64, tpu.core_type = #tpu.core_type<tc>, window_params = [{transform_indices = @transform_0, window_bounds = array<i64: 1, 128, 128>}, {transform_indices = @transform_1, window_bounds = array<i64: 1, 128, 16>}, {transform_indices = @transform_2, window_bounds = array<i64: 1, 8, 128>}, {pipeline_mode = #tpu.pipeline_mode<synchronous>, transform_indices = @transform_3, window_bounds = array<i64: 400, 128>}, {pipeline_mode = #tpu.pipeline_mode<synchronous>, transform_indices = @transform_4, window_bounds = array<i64: 8, 128>}, {transform_indices = @transform_5, window_bounds = array<i64: 1, 8, 128>}]} {
    %c0 = arith.constant 0 : index
    %c0_0 = arith.constant 0 : index
    %c0_1 = arith.constant 0 : index
    %0 = vector.load %arg1[%c0, %c0_0, %c0_1] : memref<1x128x128xbf16, #tpu.memory_space<vmem>>, vector<1x128x128xbf16>
    %1 = vector.shape_cast %0 : vector<1x128x128xbf16> to vector<128x128xbf16>
    %c0_2 = arith.constant 0 : index
    %c0_3 = arith.constant 0 : index
    %c0_4 = arith.constant 0 : index
    %2 = vector.load %arg2[%c0_2, %c0_3, %c0_4] : memref<1x128x16xbf16, #tpu.memory_space<vmem>>, vector<1x128x16xbf16>
    %3 = vector.shape_cast %2 : vector<1x128x16xbf16> to vector<128x16xbf16>
    %c0_5 = arith.constant 0 : index
    %c0_6 = arith.constant 0 : index
    %c0_7 = arith.constant 0 : index
    %4 = vector.load %arg3[%c0_5, %c0_6, %c0_7] : memref<1x8x128xbf16, #tpu.memory_space<vmem>>, vector<1x8x128xbf16>
    %5 = vector.shape_cast %4 : vector<1x8x128xbf16> to vector<8x128xbf16>
    %c0_8 = arith.constant 0 : index
    %c0_9 = arith.constant 0 : index
    %6 = vector.load %arg4[%c0_8, %c0_9] : memref<400x128xbf16, #tpu.memory_space<vmem>>, vector<16x128xbf16>
    %c16 = arith.constant 16 : index
    %c0_10 = arith.constant 0 : index
    %7 = vector.load %arg4[%c16, %c0_10] : memref<400x128xbf16, #tpu.memory_space<vmem>>, vector<128x128xbf16>
    %c144 = arith.constant 144 : index
    %c0_11 = arith.constant 0 : index
    %8 = vector.load %arg4[%c144, %c0_11] : memref<400x128xbf16, #tpu.memory_space<vmem>>, vector<128x128xbf16>
    %c272 = arith.constant 272 : index
    %c0_12 = arith.constant 0 : index
    %9 = vector.load %arg4[%c272, %c0_12] : memref<400x128xbf16, #tpu.memory_space<vmem>>, vector<128x128xbf16>
    %c0_13 = arith.constant 0 : index
    %c0_14 = arith.constant 0 : index
    %10 = vector.load %arg5[%c0_13, %c0_14] : memref<8x128xf32, #tpu.memory_space<vmem>>, vector<1x128xf32>
    %c1 = arith.constant 1 : index
    %c0_15 = arith.constant 0 : index
    %11 = vector.load %arg5[%c1, %c0_15] : memref<8x128xf32, #tpu.memory_space<vmem>>, vector<1x128xf32>
    %c2 = arith.constant 2 : index
    %c0_16 = arith.constant 0 : index
    %12 = vector.load %arg5[%c2, %c0_16] : memref<8x128xf32, #tpu.memory_space<vmem>>, vector<1x128xf32>
    %c3 = arith.constant 3 : index
    %c0_17 = arith.constant 0 : index
    %13 = vector.load %arg5[%c3, %c0_17] : memref<8x128xf32, #tpu.memory_space<vmem>>, vector<1x128xf32>
    %cst = arith.constant dense<0.000000e+00> : vector<128x16xf32>
    %14 = tpu.matmul %1, %3, %cst {dimension_numbers = #tpu.dot_dimension_numbers<[1], [0], [0], [1], [0, 0, 1, 1], [], []>} : vector<128x128xbf16>, vector<128x16xbf16>, vector<128x16xf32> -> vector<128x16xf32>
    %15 = arith.truncf %14 : vector<128x16xf32> to vector<128x16xbf16>
    %cst_18 = arith.constant dense<0.000000e+00> : vector<128x128xf32>
    %16 = tpu.matmul %15, %6, %cst_18 {dimension_numbers = #tpu.dot_dimension_numbers<[1], [0], [0], [1], [0, 0, 1, 1], [], []>} : vector<128x16xbf16>, vector<16x128xbf16>, vector<128x128xf32> -> vector<128x128xf32>
    %17 = vector.broadcast %10 : vector<1x128xf32> to vector<128x128xf32>
    %18 = arith.addf %16, %17 : vector<128x128xf32>
    %cst_19 = arith.constant 0.000000e+00 : f32
    %19 = vector.broadcast %cst_19 : f32 to vector<128x128xf32>
    %20 = arith.maximumf %18, %19 : vector<128x128xf32>
    %21 = arith.truncf %20 : vector<128x128xf32> to vector<128x128xbf16>
    %cst_20 = arith.constant dense<0.000000e+00> : vector<128x128xf32>
    %22 = tpu.matmul %1, %21, %cst_20 {dimension_numbers = #tpu.dot_dimension_numbers<[1], [0], [0], [1], [0, 0, 1, 1], [], []>} : vector<128x128xbf16>, vector<128x128xbf16>, vector<128x128xf32> -> vector<128x128xf32>
    %23 = arith.truncf %22 : vector<128x128xf32> to vector<128x128xbf16>
    %cst_21 = arith.constant dense<0.000000e+00> : vector<128x128xf32>
    %24 = tpu.matmul %23, %7, %cst_21 {dimension_numbers = #tpu.dot_dimension_numbers<[1], [0], [0], [1], [0, 0, 1, 1], [], []>} : vector<128x128xbf16>, vector<128x128xbf16>, vector<128x128xf32> -> vector<128x128xf32>
    %25 = vector.broadcast %11 : vector<1x128xf32> to vector<128x128xf32>
    %26 = arith.addf %24, %25 : vector<128x128xf32>
    %cst_22 = arith.constant 0.000000e+00 : f32
    %27 = vector.broadcast %cst_22 : f32 to vector<128x128xf32>
    %28 = arith.maximumf %26, %27 : vector<128x128xf32>
    %29 = arith.truncf %28 : vector<128x128xf32> to vector<128x128xbf16>
    %cst_23 = arith.constant dense<0.000000e+00> : vector<8x128xf32>
    %30 = tpu.matmul %5, %29, %cst_23 {dimension_numbers = #tpu.dot_dimension_numbers<[1], [0], [0], [1], [0, 0, 1, 1], [], []>} : vector<8x128xbf16>, vector<128x128xbf16>, vector<8x128xf32> -> vector<8x128xf32>
    %31 = arith.truncf %30 : vector<8x128xf32> to vector<8x128xbf16>
    %cst_24 = arith.constant dense<0.000000e+00> : vector<8x128xf32>
    %32 = tpu.matmul %31, %8, %cst_24 {dimension_numbers = #tpu.dot_dimension_numbers<[1], [0], [0], [1], [0, 0, 1, 1], [], []>} : vector<8x128xbf16>, vector<128x128xbf16>, vector<8x128xf32> -> vector<8x128xf32>
    %33 = vector.broadcast %12 : vector<1x128xf32> to vector<8x128xf32>
    %34 = arith.addf %32, %33 : vector<8x128xf32>
    %cst_25 = arith.constant 0.000000e+00 : f32
    %35 = vector.broadcast %cst_25 : f32 to vector<8x128xf32>
    %36 = arith.maximumf %34, %35 : vector<8x128xf32>
    %37 = arith.truncf %36 : vector<8x128xf32> to vector<8x128xbf16>
    %cst_26 = arith.constant dense<0.000000e+00> : vector<8x128xf32>
    %38 = tpu.matmul %37, %9, %cst_26 {dimension_numbers = #tpu.dot_dimension_numbers<[1], [0], [0], [1], [0, 0, 1, 1], [], []>} : vector<8x128xbf16>, vector<128x128xbf16>, vector<8x128xf32> -> vector<8x128xf32>
    %39 = vector.broadcast %13 : vector<1x128xf32> to vector<8x128xf32>
    %40 = arith.addf %38, %39 : vector<8x128xf32>
    %c0_27 = arith.constant 0 : index
    %c0_28 = arith.constant 0 : index
    %c0_29 = arith.constant 0 : index
    %41 = vector.load %arg6[%c0_27, %c0_28, %c0_29] : memref<1x8x128xf32, #tpu.memory_space<vmem>>, vector<1x8x128xf32>
    %42 = vector.shape_cast %41 : vector<1x8x128xf32> to vector<8x128xf32>
    %43 = vector.shape_cast %40 : vector<8x128xf32> to vector<1x8x128xf32>
    tpu.vector_store %arg6[%c0_27, %c0_28, %c0_29], %43 {strides = array<i32>} : memref<1x8x128xf32, #tpu.memory_space<vmem>>, vector<1x8x128xf32>,
    return
  }
  func.func @transform_0(%arg0: i32) -> (i32, i32, i32) {
    %c0_i32 = arith.constant 0 : i32
    %c0_i32_0 = arith.constant 0 : i32
    %c0_i32_1 = arith.constant 0 : i32
    return %arg0, %c0_i32, %c0_i32_0 : i32, i32, i32
  }
  func.func @transform_1(%arg0: i32) -> (i32, i32, i32) {
    %c0_i32 = arith.constant 0 : i32
    %c0_i32_0 = arith.constant 0 : i32
    %c0_i32_1 = arith.constant 0 : i32
    return %arg0, %c0_i32, %c0_i32_0 : i32, i32, i32
  }
  func.func @transform_2(%arg0: i32) -> (i32, i32, i32) {
    %c0_i32 = arith.constant 0 : i32
    %c0_i32_0 = arith.constant 0 : i32
    %c0_i32_1 = arith.constant 0 : i32
    return %arg0, %c0_i32, %c0_i32_0 : i32, i32, i32
  }
  func.func @transform_3(%arg0: i32) -> (i32, i32) {
    %c0_i32 = arith.constant 0 : i32
    %c0_i32_0 = arith.constant 0 : i32
    %c0_i32_1 = arith.constant 0 : i32
    return %c0_i32, %c0_i32_0 : i32, i32
  }
  func.func @transform_4(%arg0: i32) -> (i32, i32) {
    %c0_i32 = arith.constant 0 : i32
    %c0_i32_0 = arith.constant 0 : i32
    %c0_i32_1 = arith.constant 0 : i32
    return %c0_i32, %c0_i32_0 : i32, i32
  }
  func.func @transform_5(%arg0: i32) -> (i32, i32, i32) {
    %c0_i32 = arith.constant 0 : i32
    %c0_i32_0 = arith.constant 0 : i32
    %c0_i32_1 = arith.constant 0 : i32
    return %arg0, %c0_i32, %c0_i32_0 : i32, i32, i32
  }
}

</mosaic_0001>

<bundles_post_ra>
// kernel: molecule_gcn_forward.1
= control target key start
LH: loop header
LB: loop body
LE: loop exit
PB: predicated region body
PF: predicated region fallthrough
CT: control target
= control target key end

     0   :  { %10 = vsyncpa [#allocation3], 0  ;;  %s2106_s0 = inlined_call_operand.vmem [shape: bf16[8,128,128], index: 0, kind: input, shape index: {}]   ;;  %s2107_s1 = inlined_call_operand.vmem [shape: bf16[8,128,16], index: 1, kind: input, shape index: {}]   ;;  %s2108_s2 = inlined_call_operand.vmem [shape: bf16[8,8,128], index: 2, kind: input, shape index: {}]   ;;  %s2109_s3 = inlined_call_operand.hbm [shape: bf16[400,128], index: 3, kind: input, shape index: {}]   ;;  %s2110_s4 = inlined_call_operand.vmem [shape: f32[8,128], index: 4, kind: input, shape index: {}]   ;;  %s2111_s5 = inlined_call_operand.hbm [shape: f32[8,8,128], index: 5, kind: output, shape index: {}]  }
   0x1   :  { %11 = vsyncpa [#allocation4], 0 }
   0x2   :  { %13 = vsyncpa [#allocation4 + $0x1], 0  ;;  %s1887_s18 = smov 0   ;;  %s1889_s19 = smov 0  }
   0x3   :  { %s1891_s20 = smov 0   ;;  %s1893_s21 = smov 0  }
   0x4 LB: > { %s1908_s22 = sadd.s32 4294967295, %s1849_s21   ;;  %s1335_s23 = sadd.s32 4294967294, %s1849_s21   ;;  %s1849_s21 = sphi %s1893_s21, %s2119_s21   ;;  %s1845_s20 = sphi %s1891_s20, %s2118_s20   ;;  %s1841_s19 = sphi %s1889_s19, %s2117_s19   ;;  %s1837_s18 = sphi %s1887_s18, %s2116_s18  }
   0x5   : > { %s1912_s24 = sadd.s32 1, %s1849_s21   ;;  %s146_s25 = sadd.s32 1, %s1845_s20 }
   0x6   : > { %s143_s26 = ssub.s32 %s1849_s21, %s1912_s24  ;;  %p156_p0 = scmp.ne.s32.totalorder %s1845_s20, %s1841_s19 }
   0x7   : > { %p144_p1 = scmp.eq.s32.totalorder %s143_s26, 0  ;;  %p157_p2 = scmp.eq.s32.totalorder %s1908_s22, 7 }
   0x8   : > { %p162_p3 = scmp.ne.s32.totalorder %s1841_s19, %s1837_s18  ;;  %p163_p4 = scmp.eq.s32.totalorder %s1335_s23, 7 }
   0x9   : > { %s1923_s27 = scalar_select %p144_p1, %s1845_s20, %s146_s25  }
   0xa   : > { %p1925_p5 = por %p157_p2, %p156_p0  ;;  %p1929_p6 = por %p163_p4, %p162_p3 }
   0xb   : > { %p1336_p7 = scmp.ge.s32.totalorder %s1849_s21, 1  ;;  %p170_p8 = scmp.lt.s32.totalorder %s1849_s21, 9 }
   0xc   : > { %s2113_s29 = scalar_select %p1929_p6, 1, 0 }
   0xd   : > { %p1678_p9 = scmp.eq.s32.totalorder %s1908_s22, 0  ;;  %p1936_p10 = pnand %p1336_p7, %p170_p8 }
   0xe   : > { %s1851_s6 = smov [#allocation2]  }
   0xf   : > { %s182_s7 = sshll.u32 %s1851_s6, 4  ;;  %p1670_p11 = pneg %p1936_p10  ;;  %s183_s7 = int_to_ptr.vmem [resolvable:$true] %s182_s7 }
  0x10   : > { %s1770_s8 = scalar_lea.vmem %s183_s7, 3200  ;;  %p1778_p3 = scmp.lt.s32.totalorder %s183_s7, %s183_s7 }
  0x11   : > { %p1671_p12 = pnand %p1678_p9, %p1670_p11  ;;  %p1771_p0 = scmp.ne.s32.totalorder %s183_s7, %s1770_s8 }
  0x12   : > { %p1779_p4 = scmp.lt.s32.totalorder %s1770_s8, %s1770_s8 }
  0x13   : > { %p1761_p13 = pneg %p1671_p12 }
  0x14   : > { %p1780_p6 = por %p1779_p4, %p1778_p3 }
  0x15   : > { %p1773_p1 = pnand %p1771_p0, %p1761_p13 }
  0x17   : > { %p1774_p2 = pneg %p1773_p1 }
  0x19   : > { %p1781_p7 = pnand %p1780_p6, %p1774_p2 }
  0x1b   : > { %1784 = shalt.err (!%p1781_p7)
}
  0x1c   : > { %s1852_s9 = smov 64   ;;  %s1853_s10 = smov 4  }
  0x1d   : > { %1673 = dma.hbm_to_vmem [thread:$0]  (!%p1671_p12), %s2109_s3, 3200, %s183_s7, [#allocation3], %s1852_s9, %s1852_s9, %s1853_s10  }
  0x1e   : > { %224 = sbr.rel (%p1936_p10) target bundleno = 1599 (0x63f), region = 40 }
  0x23   : > { %1828 = dma.done.wait (%p1678_p9), [#allocation3], 3200  }
  0x24   : > { %1830 = vsyncadd (%p1678_p9), [#allocation3], 4294964096  ;;  %p261_p8 = scmp.lt.s32.totalorder %s1908_s22, 7  ;;  %v1734_v16 = vld [vmem:[#allocation2] sm:$0xff]   ;;  %vm574_vm0 = vcmask 130048   ;;  %v1736_v42 = vld [vmem:[#allocation2 + $0x38] sm:$0xff]  }
  0x25   : > { %1522 = vmatprep.subr.bf16.mxu1 %v1734_v16  ;;  %v1735_v41 = vld [vmem:[#allocation2 + $0x40] sm:$0xff]   ;;  %v1737_v43 = vld [vmem:[#allocation2 + $0x30] sm:$0xff]   ;;  %v1738_v44 = vld [vmem:[#allocation2 + $0x28] sm:$0xff]   ;;  %vm1855_vm1 = vmmov 0   ;;  %s258_s15 = sand.u32 1, %s1841_s19   ;;  %s1401_s25 = sshll.u32 %s1908_s22, 7 }
  0x26   : > { %s1955_s13 = scalar_select %p261_p8, %s1908_s22, 7  ;;  %1523 = vmatpush3.bf16.msra.mxu1 %v1734_v16  ;;  %v1739_v45 = vld [vmem:[#allocation2 + $0x20] sm:$0xff]   ;;  %v1740_v46 = vld [vmem:[#allocation2 + $0x18] sm:$0xff]  }
  0x27   : > { %v1363_v60 = vld [vmem:[%s2110_s4] ss:$0 sm:$0xff]  ;;  %s1341_s16 = sshll.u32 %s258_s15, 3  ;;  %s2065_s8 = scalar_lea.hbm %s2111_s5, %s1401_s25 }
  0x28   : > { %s1404_s14 = sshll.u32 %s1955_s13, 6  ;;  %s1346_s9 = sshll.u32 %s1955_s13, 2 }
  0x29   : > { %s270_s17 = scalar_lea.vmem %s2107_s1, %s1404_s14  ;;  %s1964_s26 = scalar_lea.vmem %s2106_s0, %s1404_s14 }
  0x2a   : > { %v1718_v0 = vld [vmem:[%s270_s17 + $0x38] sm:$0xff]   ;;  %v1719_v1 = vld [vmem:[%s270_s17 + $0x30] sm:$0xff]   ;;  %v1720_v2 = vld [vmem:[%s270_s17 + $0x28] sm:$0xff]   ;;  %s274_s12 = scalar_lea.vmem %s2108_s2, %s1346_s9  ;;  %s1227_s9 = scalar_lea.sflag [#allocation4], %s258_s15 }
  0x2b   : > { %1490 = vmatprep.subr.bf16.mxu0 %v1718_v0  ;;  %v1721_v3 = vld [vmem:[%s270_s17 + $0x20] sm:$0xff]   ;;  %v1722_v5 = vld [vmem:[%s270_s17 + $0x18] sm:$0xff]   ;;  %v1723_v6 = vld [vmem:[%s270_s17 + $0x10] sm:$0xff]   ;;  %s1856_s22 = smov [#allocation5]  }
  0x2c   : > { %1491 = vmatpush3.bf16.msra.mxu0 %v1718_v0  ;;  %v1967_v4 = vld [vmem:[%s1964_s26] sm:$0xff]   ;;  %v1724_v7 = vld [vmem:[%s270_s17 + $0x8] sm:$0xff]   ;;  %v1974_v10 = vld [vmem:[%s1964_s26 + $0x10] sm:$0xff]   ;;  %s1789_s11 = sshll.u32 %s1856_s22, 4  ;;  %s1790_s11 = int_to_ptr.vmem [resolvable:$false] %s1789_s11 }
  0x2d   : > { %1492 = vmatprep.subr.bf16.mxu0 %v1719_v1  ;;  %1506 = vmatprep.mubr.bf16.mxu0 %v1967_v4  ;;  %v1725_v8 = vld [vmem:[%s270_s17] sm:$0xff]   ;;  %v1971_v9 = vld [vmem:[%s1964_s26 + $0x8] sm:$0xff]   ;;  %v1979_v11 = vld [vmem:[%s1964_s26 + $0x18] sm:$0xff]  }
  0x2e   : > { %v1982_v12 = vld [vmem:[%s1964_s26 + $0x20] sm:$0xff]   ;;  %v1987_v13 = vld [vmem:[%s1964_s26 + $0x28] sm:$0xff]   ;;  %v1990_v14 = vld [vmem:[%s1964_s26 + $0x30] sm:$0xff]  }
  0x2f   : > { %v1995_v15 = vld [vmem:[%s1964_s26 + $0x38] sm:$0xff]   ;;  %s260_s26 = scalar_lea.vmem [#allocation5], %s1341_s16 }
  0x30   : > { %1493 = vmatpush3.bf16.msra.mxu0 %v1719_v1  ;;  %s1240_s30 = sshll.u32 %s260_s26, 4  ;;  %s2067_s30 = int_to_ptr.vmem [resolvable:$true] %s1240_s30 }
  0x31   : > { %1494 = vmatprep.subr.bf16.mxu0 %v1720_v2  ;;  %s1785_s10 = scalar_lea.vmem %s2067_s30, 128  ;;  %p1792_p11 = scmp.lt.s32.totalorder %s2067_s30, %s1790_s11 }
  0x32   : > { %p1786_p6 = scmp.ne.s32.totalorder %s2067_s30, %s1785_s10 }
  0x34   : > { %1495 = vmatpush3.bf16.msra.mxu0 %v1720_v2  ;;  %p1787_p9 = pnand %p1786_p6, %p1925_p5 }
  0x35   : > { %1496 = vmatprep.subr.bf16.mxu0 %v1721_v3 }
  0x36   : > { %p1788_p10 = pneg %p1787_p9 }
  0x38   : > { %1497 = vmatpush3.bf16.msra.mxu0 %v1721_v3 }
  0x39   : > { %1498 = vmatprep.subr.bf16.mxu0 %v1722_v5 }
  0x3c   : > { %1499 = vmatpush3.bf16.msra.mxu0 %v1722_v5 }
  0x3d   : > { %1500 = vmatprep.subr.bf16.mxu0 %v1723_v6 }
  0x40   : > { %1501 = vmatpush3.bf16.msra.mxu0 %v1723_v6 }
  0x41   : > { %1502 = vmatprep.subr.bf16.mxu0 %v1724_v7 }
  0x44   : > { %1503 = vmatpush3.bf16.msra.mxu0 %v1724_v7 }
  0x45   : > { %1504 = vmatprep.subr.bf16.mxu0 %v1725_v8 }
  0x48   : > { %1505 = vmatpush3.bf16.msra.mxu0 %v1725_v8 }
  0x49   : > { %1572 = vmatprep.subr.bf16.mxu0 %v1735_v41 }
  0x4b   : > { %1507 = vmatmul.mubr.bf16.vlgmr.msra.gmra.mxu0 %v1971_v9 }
  0x4c   : > { %1510 = vmatprep.mubr.bf16.mxu0 %v1974_v10  ;;  %1573 = vmatpush3.bf16.msra.mxu0 %v1735_v41 }
  0x4d   : > { %1574 = vmatprep.subr.bf16.mxu0 %v1736_v42 }
  0x50   : > { %1575 = vmatpush3.bf16.msra.mxu0 %v1736_v42 }
  0x51   : > { %1576 = vmatprep.subr.bf16.mxu0 %v1737_v43 }
  0x53   : > { %1511 = vmatmul.mubr.bf16.gmra.mxu0 %v1979_v11 }
  0x54   : > { %1514 = vmatprep.mubr.bf16.mxu0 %v1982_v12  ;;  %1577 = vmatpush3.bf16.msra.mxu0 %v1737_v43 }
  0x55   : > { %1578 = vmatprep.subr.bf16.mxu0 %v1738_v44 }
  0x58   : > { %1579 = vmatpush3.bf16.msra.mxu0 %v1738_v44 }
  0x59   : > { %1580 = vmatprep.subr.bf16.mxu0 %v1739_v45 }
  0x5b   : > { %1515 = vmatmul.mubr.bf16.gmra.mxu0 %v1987_v13 }
  0x5c   : > { %1518 = vmatprep.mubr.bf16.mxu0 %v1990_v14  ;;  %1581 = vmatpush3.bf16.msra.mxu0 %v1739_v45 }
  0x5d   : > { %1582 = vmatprep.subr.bf16.mxu0 %v1740_v46 }
  0x60   : > { %1583 = vmatpush3.bf16.msra.mxu0 %v1740_v46 }
  0x63   : > { %1519 = vmatmul.mubr.bf16.gmra.mxu0 %v1995_v15 }
 0x10b   : > { %v1508_v17 = vpop.f32.mrf.mxu0 }
 0x10d   : > { %v493_v18 = vpop.f32.mrf.mxu0 }
 0x10f   : > { %v1509_v19 = vpop.f32.mrf.mxu0 }
 0x110   : > { %v557_v22 = vpack.c.bf16 %v1509_v19, %v1508_v17 }
 0x111   : > { %v496_v20 = vpop.f32.mrf.mxu0 }
 0x112   : > { %v556_v21 = vpack.c.bf16 %v496_v20, %v493_v18 }
 0x113   : > { %v1512_v23 = vpop.f32.mrf.mxu0 }
 0x114   : > { %1524 = vmatprep.mubr.msk.bf16.mxu1 %vm574_vm0, %v556_v21 }
 0x115   : > { %v509_v24 = vpop.f32.mrf.mxu0  ;;  %1525 = vmatmul.mubr.msk.bf16.vlgmr.msra.gmra.mxu1 %vm574_vm0, %v557_v22 }
 0x117   : > { %v1513_v25 = vpop.f32.mrf.mxu0 }
 0x118   : > { %v559_v28 = vpack.c.bf16 %v1513_v25, %v1512_v23 }
 0x119   : > { %v512_v26 = vpop.f32.mrf.mxu0 }
 0x11a   : > { %v558_v27 = vpack.c.bf16 %v512_v26, %v509_v24 }
 0x11b   : > { %v1516_v29 = vpop.f32.mrf.mxu0 }
 0x11c   : > { %1528 = vmatprep.mubr.msk.bf16.mxu1 %vm574_vm0, %v558_v27 }
 0x11d   : > { %v525_v30 = vpop.f32.mrf.mxu0  ;;  %1529 = vmatmul.mubr.msk.bf16.gmra.mxu1 %vm574_vm0, %v559_v28 }
 0x11f   : > { %v1517_v31 = vpop.f32.mrf.mxu0 }
 0x120   : > { %v561_v34 = vpack.c.bf16 %v1517_v31, %v1516_v29 }
 0x121   : > { %v528_v32 = vpop.f32.mrf.mxu0 }
 0x122   : > { %v560_v33 = vpack.c.bf16 %v528_v32, %v525_v30 }
 0x123   : > { %v1520_v35 = vpop.f32.mrf.mxu0 }
 0x124   : > { %1532 = vmatprep.mubr.msk.bf16.mxu1 %vm574_vm0, %v560_v33 }
 0x125   : > { %v541_v36 = vpop.f32.mrf.mxu0  ;;  %1533 = vmatmul.mubr.msk.bf16.gmra.mxu1 %vm574_vm0, %v561_v34 }
 0x127   : > { %v1521_v37 = vpop.f32.mrf.mxu0 }
 0x128   : > { %v563_v40 = vpack.c.bf16 %v1521_v37, %v1520_v35 }
 0x129   : > { %v544_v38 = vpop.f32.mrf.mxu0 }
 0x12a   : > { %v562_v39 = vpack.c.bf16 %v544_v38, %v541_v36 }
 0x12c   : > { %1536 = vmatprep.mubr.msk.bf16.mxu1 %vm574_vm0, %v562_v39 }
 0x12d   : > { %1537 = vmatmul.mubr.msk.bf16.gmra.mxu1 %vm574_vm0, %v563_v40 }
 0x12e   : > { %1556 = vmatprep.mubr.bf16.mxu1 %v1967_v4 }
 0x1d5   : > { %v1526_v47 = vpop.f32.mrf.mxu1 }
 0x1d6   : > { %v642_v36 = vadd.f32 %v1526_v47, %v1363_v60  ;;  %v1741_v47 = vld [vmem:[#allocation2 + $0x10] sm:$0xff]  }
 0x1d7   : > { %v633_v48 = vpop.f32.mrf.mxu1  ;;  %1584 = vmatprep.subr.bf16.mxu0 %v1741_v47 }
 0x1d8   : > { %v698_v41 = vmax.f32 %v642_v36, 0.0  ;;  %v634_v42 = vadd.f32 %v1363_v60, %v633_v48  ;;  %1585 = vmatpush3.bf16.msra.mxu0 %v1741_v47  ;;  %v1742_v48 = vld [vmem:[#allocation2 + $0x8] sm:$0xff]  }
 0x1d9   : > { %v1527_v49 = vpop.f32.mrf.mxu1  ;;  %1586 = vmatprep.subr.bf16.mxu0 %v1742_v48 }
 0x1da   : > { %v645_v33 = vadd.f32 %v1527_v49, %v1363_v60  ;;  %v696_v45 = vmax.f32 %v634_v42, 0.0 }
 0x1db   : > { %v636_v50 = vpop.f32.mrf.mxu1 }
 0x1dc   : > { %v699_v38 = vmax.f32 %v645_v33, 0.0  ;;  %v637_v39 = vadd.f32 %v1363_v60, %v636_v50  ;;  %1587 = vmatpush3.bf16.msra.mxu0 %v1742_v48 }
 0x1dd   : > { %v1530_v51 = vpop.f32.mrf.mxu1 }
 0x1de   : > { %v658_v26 = vadd.f32 %v1530_v51, %v1363_v60  ;;  %v713_v43 = vpack.c.bf16 %v699_v38, %v698_v41  ;;  %v697_v44 = vmax.f32 %v637_v39, 0.0 }
 0x1df   : > { %v649_v52 = vpop.f32.mrf.mxu1 }
 0x1e0   : > { %v702_v31 = vmax.f32 %v658_v26, 0.0  ;;  %v650_v32 = vadd.f32 %v1363_v60, %v649_v52  ;;  %v712_v46 = vpack.c.bf16 %v697_v44, %v696_v45 }
 0x1e1   : > { %v1531_v53 = vpop.f32.mrf.mxu1 }
 0x1e2   : > { %v661_v23 = vadd.f32 %v1531_v53, %v1363_v60  ;;  %v700_v37 = vmax.f32 %v650_v32, 0.0 }
 0x1e3   : > { %v652_v54 = vpop.f32.mrf.mxu1 }
 0x1e4   : > { %v703_v28 = vmax.f32 %v661_v23, 0.0  ;;  %v653_v29 = vadd.f32 %v1363_v60, %v652_v54 }
 0x1e5   : > { %v1534_v55 = vpop.f32.mrf.mxu1 }
 0x1e6   : > { %v674_v7 = vadd.f32 %v1534_v55, %v1363_v60  ;;  %v715_v34 = vpack.c.bf16 %v703_v28, %v702_v31  ;;  %v701_v35 = vmax.f32 %v653_v29, 0.0 }
 0x1e7   : > { %v665_v56 = vpop.f32.mrf.mxu1 }
 0x1e8   : > { %v706_v21 = vmax.f32 %v674_v7, 0.0  ;;  %v666_v22 = vadd.f32 %v1363_v60, %v665_v56  ;;  %v714_v40 = vpack.c.bf16 %v701_v35, %v700_v37  ;;  %v1747_v7 = vld [vmem:[#allocation2 + $0x60] sm:$0xff]  }
 0x1e9   : > { %v1535_v57 = vpop.f32.mrf.mxu1 }
 0x1ea   : > { %v677_v3 = vadd.f32 %v1535_v57, %v1363_v60  ;;  %v704_v27 = vmax.f32 %v666_v22, 0.0 }
 0x1eb   : > { %v668_v58 = vpop.f32.mrf.mxu1 }
 0x1ec   : > { %v707_v18 = vmax.f32 %v677_v3, 0.0  ;;  %v669_v19 = vadd.f32 %v1363_v60, %v668_v58  ;;  %v1743_v3 = vld [vmem:[#allocation2 + $0x80] sm:$0xff]  }
 0x1ed   : > { %v1538_v59 = vpop.f32.mrf.mxu1 }
 0x1ee   : > { %v690_v62 = vadd.f32 %v1538_v59, %v1363_v60  ;;  %v717_v24 = vpack.c.bf16 %v707_v18, %v706_v21  ;;  %v705_v25 = vmax.f32 %v669_v19, 0.0 }
 0x1ef   : > { %v681_v61 = vpop.f32.mrf.mxu1 }
 0x1f0   : > { %v682_v0 = vadd.f32 %v1363_v60, %v681_v61  ;;  %v710_v4 = vmax.f32 %v690_v62, 0.0  ;;  %v716_v30 = vpack.c.bf16 %v705_v25, %v704_v27 }
 0x1f1   : > { %v1539_v63 = vpop.f32.mrf.mxu1 }
 0x1f2   : > { %v693_v1 = vadd.f32 %v1539_v63, %v1363_v60  ;;  %v708_v8 = vmax.f32 %v682_v0, 0.0 }
 0x1f3   : > { %v684_v2 = vpop.f32.mrf.mxu1 }
 0x1f4   : > { %v711_v5 = vmax.f32 %v693_v1, 0.0  ;;  %v685_v6 = vadd.f32 %v1363_v60, %v684_v2  ;;  %v1854_v2 = vmov 0.0  }
 0x1f5   : > { %1624 = vmatprep.subr.bf16.mxu0 %v1854_v2 }
 0x1f6   : > { %v719_v16 = vpack.c.bf16 %v711_v5, %v710_v4  ;;  %v709_v17 = vmax.f32 %v685_v6, 0.0  ;;  %v1744_v4 = vld [vmem:[#allocation2 + $0x78] sm:$0xff]   ;;  %v1745_v5 = vld [vmem:[#allocation2 + $0x70] sm:$0xff]   ;;  %v1746_v6 = vld [vmem:[#allocation2 + $0x68] sm:$0xff]  }
 0x1f8   : > { %v718_v20 = vpack.c.bf16 %v709_v17, %v708_v8  ;;  %1540 = vmatprep.subr.bf16.mxu1 %v719_v16  ;;  %v1748_v8 = vld [vmem:[#allocation2 + $0x58] sm:$0xff]  }
 0x1f9   : > { %1541 = vmatpush3.bf16.msra.mxu1 %v719_v16  ;;  %v1749_v16 = vld [vmem:[#allocation2 + $0x50] sm:$0xff]  }
 0x1fa   : > { %1542 = vmatprep.subr.bf16.mxu1 %v718_v20 }
 0x1fd   : > { %1543 = vmatpush3.bf16.msra.mxu1 %v718_v20 }
 0x1fe   : > { %1544 = vmatprep.subr.bf16.mxu1 %v717_v24 }
 0x201   : > { %1545 = vmatpush3.bf16.msra.mxu1 %v717_v24 }
 0x202   : > { %1546 = vmatprep.subr.bf16.mxu1 %v716_v30 }
 0x205   : > { %1547 = vmatpush3.bf16.msra.mxu1 %v716_v30  ;;  %v1373_v30 = vld [vmem:[%s2110_s4 + $0x1] ss:$0 sm:$0xff] }
 0x206   : > { %1548 = vmatprep.subr.bf16.mxu1 %v715_v34 }
 0x209   : > { %1549 = vmatpush3.bf16.msra.mxu1 %v715_v34 }
 0x20a   : > { %1550 = vmatprep.subr.bf16.mxu1 %v714_v40 }
 0x20d   : > { %1551 = vmatpush3.bf16.msra.mxu1 %v714_v40 }
 0x20e   : > { %1552 = vmatprep.subr.bf16.mxu1 %v713_v43 }
 0x211   : > { %1553 = vmatpush3.bf16.msra.mxu1 %v713_v43 }
 0x212   : > { %1554 = vmatprep.subr.bf16.mxu1 %v712_v46 }
 0x215   : > { %1555 = vmatpush3.bf16.msra.mxu1 %v712_v46 }
 0x216   : > { %1604 = vmatprep.subr.bf16.mxu1 %v1854_v2 }
 0x218   : > { %1557 = vmatmul.mubr.bf16.vlgmr.msra.gmra.mxu1 %v1971_v9 }
 0x219   : > { %1560 = vmatprep.mubr.bf16.mxu1 %v1974_v10 }
 0x220   : > { %1561 = vmatmul.mubr.bf16.gmra.mxu1 %v1979_v11 }
 0x221   : > { %1564 = vmatprep.mubr.bf16.mxu1 %v1982_v12 }
 0x228   : > { %1565 = vmatmul.mubr.bf16.gmra.mxu1 %v1987_v13 }
 0x229   : > { %1568 = vmatprep.mubr.bf16.mxu1 %v1990_v14 }
 0x230   : > { %1569 = vmatmul.mubr.bf16.gmra.mxu1 %v1995_v15 }
 0x231   : > { %1620 = vmatprep.mubr.msk.bf16.mxu1 %vm1855_vm1, %v1854_v2 }
 0x2d8   : > { %v1558_v49 = vpop.f32.mrf.mxu1 }
 0x2da   : > { %v754_v9 = vpop.f32.mrf.mxu1 }
 0x2dc   : > { %v1559_v50 = vpop.f32.mrf.mxu1 }
 0x2dd   : > { %v818_v11 = vpack.c.bf16 %v1559_v50, %v1558_v49 }
 0x2de   : > { %v757_v10 = vpop.f32.mrf.mxu1 }
 0x2df   : > { %v817_v51 = vpack.c.bf16 %v757_v10, %v754_v9 }
 0x2e0   : > { %v1562_v52 = vpop.f32.mrf.mxu1 }
 0x2e1   : > { %1588 = vmatprep.mubr.bf16.mxu0 %v817_v51 }
 0x2e2   : > { %v770_v12 = vpop.f32.mrf.mxu1  ;;  %1589 = vmatmul.mubr.bf16.vlgmr.msra.gmra.mxu0 %v818_v11 }
 0x2e3   : > { %1625 = vmatpush3.bf16.msra.mxu0 %v1743_v3 }
 0x2e4   : > { %v1563_v13 = vpop.f32.mrf.mxu1  ;;  %1626 = vmatprep.subr.bf16.mxu0 %v1854_v2 }
 0x2e5   : > { %v820_v15 = vpack.c.bf16 %v1563_v13, %v1562_v52 }
 0x2e6   : > { %v773_v14 = vpop.f32.mrf.mxu1 }
 0x2e7   : > { %v819_v53 = vpack.c.bf16 %v773_v14, %v770_v12  ;;  %1627 = vmatpush3.bf16.msra.mxu0 %v1744_v4  ;;  %v308_v4 = vld [vmem:[%s274_s12] sm:$0xf]  ;;  %s1791_s12 = scalar_lea.vmem %s1790_s11, 256 }
 0x2e8   : > { %v1566_v54 = vpop.f32.mrf.mxu1  ;;  %1628 = vmatprep.subr.bf16.mxu0 %v1854_v2  ;;  %p1793_p12 = scmp.lt.s32.totalorder %s1791_s12, %s1785_s10 }
 0x2e9   : > { %1592 = vmatprep.mubr.bf16.mxu0 %v819_v53 }
 0x2ea   : > { %v786_v55 = vpop.f32.mrf.mxu1  ;;  %1593 = vmatmul.mubr.bf16.gmra.mxu0 %v820_v15  ;;  %p1794_p13 = por %p1793_p12, %p1792_p11 }
 0x2eb   : > { %1629 = vmatpush3.bf16.msra.mxu0 %v1745_v5  ;;  %v1750_v5 = vld [vmem:[#allocation2 + $0x48] sm:$0xff]  }
 0x2ec   : > { %v1567_v56 = vpop.f32.mrf.mxu1  ;;  %1630 = vmatprep.subr.bf16.mxu0 %v1854_v2  ;;  %p1795_p0 = pnand %p1794_p13, %p1788_p10 }
 0x2ed   : > { %v822_v59 = vpack.c.bf16 %v1567_v56, %v1566_v54 }
 0x2ee   : > { %v789_v57 = vpop.f32.mrf.mxu1 }
 0x2ef   : > { %v821_v58 = vpack.c.bf16 %v789_v57, %v786_v55  ;;  %1631 = vmatpush3.bf16.msra.mxu0 %v1746_v6  ;;  %v1751_v6 = vld [vmem:[#allocation2 + $0xc0] sm:$0xff]  }
 0x2f0   : > { %v1570_v60 = vpop.f32.mrf.mxu1  ;;  %1632 = vmatprep.subr.bf16.mxu0 %v1854_v2 }
 0x2f1   : > { %1596 = vmatprep.mubr.bf16.mxu0 %v821_v58 }
 0x2f2   : > { %v802_v61 = vpop.f32.mrf.mxu1  ;;  %1597 = vmatmul.mubr.bf16.gmra.mxu0 %v822_v59 }
 0x2f3   : > { %1633 = vmatpush3.bf16.msra.mxu0 %v1747_v7  ;;  %v1752_v7 = vld [vmem:[#allocation2 + $0xb8] sm:$0xff]  }
 0x2f4   : > { %v1571_v62 = vpop.f32.mrf.mxu1  ;;  %1634 = vmatprep.subr.bf16.mxu0 %v1854_v2 }
 0x2f5   : > { %v824_v1 = vpack.c.bf16 %v1571_v62, %v1570_v60 }
 0x2f6   : > { %v805_v63 = vpop.f32.mrf.mxu1 }
 0x2f7   : > { %v823_v0 = vpack.c.bf16 %v805_v63, %v802_v61  ;;  %1635 = vmatpush3.bf16.msra.mxu0 %v1748_v8  ;;  %v1753_v8 = vld [vmem:[#allocation2 + $0xb0] sm:$0xff]  }
 0x2f8   : > { %1636 = vmatprep.subr.bf16.mxu0 %v1854_v2 }
 0x2f9   : > { %1600 = vmatprep.mubr.bf16.mxu0 %v823_v0 }
 0x2fa   : > { %1601 = vmatmul.mubr.bf16.gmra.mxu0 %v824_v1 }
 0x2fb   : > { %1640 = vmatprep.mubr.msk.bf16.mxu0 %vm1855_vm1, %v1854_v2  ;;  %1637 = vmatpush3.bf16.msra.mxu0 %v1749_v16  ;;  %v1754_v16 = vld [vmem:[#allocation2 + $0xa8] sm:$0xff]  }
 0x2fc   : > { %1638 = vmatprep.subr.bf16.mxu0 %v1854_v2 }
 0x2ff   : > { %1639 = vmatpush3.bf16.msra.mxu0 %v1750_v5 }
 0x3a2   : > { %v1590_v17 = vpop.f32.mrf.mxu0 }
 0x3a3   : > { %v920_v56 = vadd.f32 %v1590_v17, %v1373_v30  ;;  %v1755_v17 = vld [vmem:[#allocation2 + $0xa0] sm:$0xff]  }
 0x3a4   : > { %v911_v18 = vpop.f32.mrf.mxu0 }
 0x3a5   : > { %v976_v61 = vmax.f32 %v920_v56, 0.0  ;;  %v912_v62 = vadd.f32 %v1373_v30, %v911_v18  ;;  %v1756_v18 = vld [vmem:[#allocation2 + $0x98] sm:$0xff]  }
 0x3a6   : > { %v1591_v19 = vpop.f32.mrf.mxu0 }
 0x3a7   : > { %v923_v15 = vadd.f32 %v1591_v19, %v1373_v30  ;;  %v974_v1 = vmax.f32 %v912_v62, 0.0 }
 0x3a8   : > { %v914_v20 = vpop.f32.mrf.mxu0 }
 0x3a9   : > { %v977_v58 = vmax.f32 %v923_v15, 0.0  ;;  %v915_v59 = vadd.f32 %v1373_v30, %v914_v20 }
 0x3aa   : > { %v1594_v21 = vpop.f32.mrf.mxu0 }
 0x3ab   : > { %v936_v51 = vadd.f32 %v1594_v21, %v1373_v30  ;;  %v991_v63 = vpack.c.bf16 %v977_v58, %v976_v61  ;;  %v975_v0 = vmax.f32 %v915_v59, 0.0 }
 0x3ac   : > { %v927_v22 = vpop.f32.mrf.mxu0 }
 0x3ad   : > { %v980_v14 = vmax.f32 %v936_v51, 0.0  ;;  %v928_v53 = vadd.f32 %v1373_v30, %v927_v22  ;;  %v990_v3 = vpack.c.bf16 %v975_v0, %v974_v1 }
 0x3ae   : > { %v1595_v23 = vpop.f32.mrf.mxu0 }
 0x3af   : > { %v939_v9 = vadd.f32 %v1595_v23, %v1373_v30  ;;  %v978_v57 = vmax.f32 %v928_v53, 0.0 }
 0x3b0   : > { %v930_v24 = vpop.f32.mrf.mxu0 }
 0x3b1   : > { %v981_v52 = vmax.f32 %v939_v9, 0.0  ;;  %v931_v12 = vadd.f32 %v1373_v30, %v930_v24  ;;  %v1757_v24 = vld [vmem:[#allocation2 + $0x90] sm:$0xff]  }
 0x3b2   : > { %v1598_v25 = vpop.f32.mrf.mxu0 }
 0x3b3   : > { %v952_v43 = vadd.f32 %v1598_v25, %v1373_v30  ;;  %v993_v54 = vpack.c.bf16 %v981_v52, %v980_v14  ;;  %v979_v55 = vmax.f32 %v931_v12, 0.0  ;;  %v1758_v25 = vld [vmem:[#allocation2 + $0x88] sm:$0xff]  }
 0x3b4   : > { %v943_v26 = vpop.f32.mrf.mxu0 }
 0x3b5   : > { %v984_v48 = vmax.f32 %v952_v43, 0.0  ;;  %v944_v49 = vadd.f32 %v1373_v30, %v943_v26  ;;  %v992_v60 = vpack.c.bf16 %v979_v55, %v978_v57  ;;  %v1382_v26 = vld [vmem:[%s2110_s4 + $0x2] ss:$0 sm:$0xff] }
 0x3b6   : > { %v1599_v27 = vpop.f32.mrf.mxu0 }
 0x3b7   : > { %v955_v40 = vadd.f32 %v1599_v27, %v1373_v30  ;;  %v982_v11 = vmax.f32 %v944_v49, 0.0 }
 0x3b8   : > { %v946_v28 = vpop.f32.mrf.mxu0 }
 0x3b9   : > { %v985_v45 = vmax.f32 %v955_v40, 0.0  ;;  %v947_v46 = vadd.f32 %v1373_v30, %v946_v28 }
 0x3ba   : > { %v1602_v29 = vpop.f32.mrf.mxu0 }
 0x3bb   : > { %v968_v32 = vadd.f32 %v1602_v29, %v1373_v30  ;;  %v995_v50 = vpack.c.bf16 %v985_v45, %v984_v48  ;;  %v983_v10 = vmax.f32 %v947_v46, 0.0 }
 0x3bc   : > { %v959_v31 = vpop.f32.mrf.mxu0 }
 0x3bd   : > { %v988_v36 = vmax.f32 %v968_v32, 0.0  ;;  %v960_v37 = vadd.f32 %v1373_v30, %v959_v31  ;;  %v994_v13 = vpack.c.bf16 %v983_v10, %v982_v11 }
 0x3be   : > { %v1603_v33 = vpop.f32.mrf.mxu0 }
 0x3bf   : > { %v971_v34 = vadd.f32 %v1603_v33, %v1373_v30  ;;  %v986_v44 = vmax.f32 %v960_v37, 0.0 }
 0x3c0   : > { %v962_v35 = vpop.f32.mrf.mxu0 }
 0x3c1   : > { %v989_v38 = vmax.f32 %v971_v34, 0.0  ;;  %v963_v39 = vadd.f32 %v1373_v30, %v962_v35 }
 0x3c3   : > { %v997_v41 = vpack.c.bf16 %v989_v38, %v988_v36  ;;  %v987_v42 = vmax.f32 %v963_v39, 0.0 }
 0x3c5   : > { %1605 = vmatpush3.bf16.msra.mxu1 %v997_v41  ;;  %v996_v47 = vpack.c.bf16 %v987_v42, %v986_v44 }
 0x3c6   : > { %1606 = vmatprep.subr.bf16.mxu1 %v1854_v2 }
 0x3c9   : > { %1607 = vmatpush3.bf16.msra.mxu1 %v996_v47 }
 0x3ca   : > { %1608 = vmatprep.subr.bf16.mxu1 %v1854_v2 }
 0x3cd   : > { %1609 = vmatpush3.bf16.msra.mxu1 %v995_v50 }
 0x3ce   : > { %1610 = vmatprep.subr.bf16.mxu1 %v1854_v2 }
 0x3d1   : > { %1611 = vmatpush3.bf16.msra.mxu1 %v994_v13 }
 0x3d2   : > { %1612 = vmatprep.subr.bf16.mxu1 %v1854_v2 }
 0x3d5   : > { %1613 = vmatpush3.bf16.msra.mxu1 %v993_v54 }
 0x3d6   : > { %1614 = vmatprep.subr.bf16.mxu1 %v1854_v2 }
 0x3d9   : > { %1615 = vmatpush3.bf16.msra.mxu1 %v992_v60 }
 0x3da   : > { %1616 = vmatprep.subr.bf16.mxu1 %v1854_v2 }
 0x3dd   : > { %1617 = vmatpush3.bf16.msra.mxu1 %v991_v63 }
 0x3de   : > { %1618 = vmatprep.subr.bf16.mxu1 %v1854_v2 }
 0x3e1   : > { %1619 = vmatpush3.bf16.msra.mxu1 %v990_v3 }
 0x3e2   : > { %1644 = vmatprep.subr.bf16.mxu1 %v1854_v2 }
 0x3e4   : > { %1621 = vmatmul.mubr.bf16.vlgmr.msra.gmra.mxu1 %v308_v4 }
 0x3e5   : > { %1660 = vmatprep.mubr.msk.bf16.mxu1 %vm1855_vm1, %v1854_v2  ;;  %1645 = vmatpush3.bf16.msra.mxu1 %v1751_v6 }
 0x3e6   : > { %1646 = vmatprep.subr.bf16.mxu1 %v1854_v2 }
 0x3e9   : > { %1647 = vmatpush3.bf16.msra.mxu1 %v1752_v7 }
 0x3ea   : > { %1648 = vmatprep.subr.bf16.mxu1 %v1854_v2 }
 0x3ed   : > { %1649 = vmatpush3.bf16.msra.mxu1 %v1753_v8 }
 0x3ee   : > { %1650 = vmatprep.subr.bf16.mxu1 %v1854_v2 }
 0x3f1   : > { %1651 = vmatpush3.bf16.msra.mxu1 %v1754_v16 }
 0x3f2   : > { %1652 = vmatprep.subr.bf16.mxu1 %v1854_v2 }
 0x3f5   : > { %1653 = vmatpush3.bf16.msra.mxu1 %v1755_v17 }
 0x3f6   : > { %1654 = vmatprep.subr.bf16.mxu1 %v1854_v2 }
 0x3f9   : > { %1655 = vmatpush3.bf16.msra.mxu1 %v1756_v18 }
 0x3fa   : > { %1656 = vmatprep.subr.bf16.mxu1 %v1854_v2 }
 0x3fd   : > { %1657 = vmatpush3.bf16.msra.mxu1 %v1757_v24 }
 0x3fe   : > { %1658 = vmatprep.subr.bf16.mxu1 %v1854_v2  ;;  %v1391_v2 = vld [vmem:[%s2110_s4 + $0x3] ss:$0 sm:$0xff] }
 0x401   : > { %1659 = vmatpush3.bf16.msra.mxu1 %v1758_v25 }
 0x4a4   : > { %v1032_v19 = vpop.f32.mrf.mxu1 }
 0x4a5   : > { %v1038_v20 = vpack.c.bf16 %v1032_v19, %v1032_v19 }
 0x4a6   : > { %v1622_v21 = vpop.f32.mrf.mxu1 }
 0x4a7   : > { %1641 = vmatmul.mubr.bf16.vlgmr.msra.gmra.mxu0 %v1038_v20 }
 0x4a8   : > { %v1035_v22 = vpop.f32.mrf.mxu1 }
 0x4aa   : > { %v1623_v23 = vpop.f32.mrf.mxu1 }
 0x567   : > { %v1125_v27 = vpop.f32.mrf.mxu0 }
 0x568   : > { %v1126_v28 = vadd.f32 %v1382_v26, %v1125_v27 }
 0x569   : > { %v1642_v29 = vpop.f32.mrf.mxu0 }
 0x56a   : > { %v1131_v30 = vmax.f32 %v1126_v28, 0.0 }
 0x56b   : > { %v1128_v31 = vpop.f32.mrf.mxu0 }
 0x56c   : > { %v1132_v32 = vpack.c.bf16 %v1131_v30, %v1131_v30 }
 0x56d   : > { %v1643_v33 = vpop.f32.mrf.mxu0 }
 0x56e   : > { %1661 = vmatmul.mubr.bf16.vlgmr.msra.gmra.mxu1 %v1132_v32 }
 0x62e   : > { %v1219_v34 = vpop.f32.mrf.mxu1 }
 0x62f   : > { %v1220_v35 = vadd.f32 %v1391_v2, %v1219_v34 }
 0x630   : > { %v1662_v36 = vpop.f32.mrf.mxu1 }
 0x631   : > { %1225 = vst [vmem:[%s260_s26] sm:$0xff] %v1220_v35 }
 0x632   : > { %v1222_v37 = vpop.f32.mrf.mxu1 }
 0x633   : > { %1798 = shalt.err (!%p1795_p0)
}
 0x634   : > { %s1799_s13 = scalar_lea.hbm %s2065_s8, 128  ;;  %s1803_s16 = scalar_lea.hbm %s2111_s5, 1024 }
 0x635   : > { %p1800_p1 = scmp.ne.s32.totalorder %s2065_s8, %s1799_s13  ;;  %p1804_p4 = scmp.lt.s32.totalorder %s2065_s8, %s2111_s5 }
 0x636   : > { %p1805_p7 = scmp.lt.s32.totalorder %s1803_s16, %s1799_s13 }
 0x637   : > { %p1801_p2 = pnand %p1800_p1, %p1925_p5 }
 0x638   : > { %p1806_p8 = por %p1805_p7, %p1804_p4 }
 0x639   : > { %p1802_p3 = pneg %p1801_p2 }
 0x63b   : > { %p1807_p6 = pnand %p1806_p8, %p1802_p3 }
 0x63d   : > { %1810 = shalt.err (!%p1807_p6)
}
 0x63e   : > { %1668 = dma.vmem_to_hbm [thread:$0]  (%p1925_p5), %s2067_s30, 128, %s2065_s8, %s1227_s9   ;;  %v1663_v38 = vpop.f32.mrf.mxu1 }
 0x63f PF: > { %p1680_p9 = scmp.ge.s32.totalorder %s1849_s21, 2  ;;  %s1252_s25 = sand.u32 1, %s1837_s18  }
 0x640   : > { %p2115_p10 = scmp.ne.s32.totalorder %s2113_s29, 0  ;;  %s1253_s26 = scalar_lea.sflag [#allocation4], %s1252_s25 }
 0x642   : > { %p1675_p11 = pnand %p1680_p9, %p2115_p10 }
 0x644   : > { %p1676_p12 = pneg %p1675_p11 }
 0x646   : > { %1832 = dma.done.wait (%p1676_p12), %s1253_s26, 128  }
 0x647   : > { %1834 = vsyncadd (%p1676_p12), %s1253_s26, 4294967168  ;;  %p16_p13 = scmp.ge.s32.totalorder %s1912_s24, 10   ;;  %s2116_s18 = smov %s1841_s19 }
 0x648   : > { %s2117_s19 = smov %s1845_s20  ;;  %s2118_s20 = smov %s1923_s27 }
 0x649   : > { %s2119_s21 = smov %s1912_s24  ;;  %18 = sbr.rel (!%p16_p13) target bundleno = 4 (0x4), region = 86 }
 0x64e   :  { %1258 = vsyncpa [#allocation3], 1 }
 0x64f   :  { %1260 = vsyncpa [#allocation3 + $0x1], 1 }
 0x650   :  { %1261 = vsyncpa [#allocation4], 1 }
 0x651   :  { %1263 = vsyncpa [#allocation4 + $0x1], 1 }

</bundles_post_ra>
